<compile_context>
chip_gen: v5e
topology: v5e:2x2
jax: 0.10.0
libtpu: 0.0.40
codegen_flags: <defaults>
</compile_context>

<pallas_src>
import functools

import jax
import jax.numpy as jnp
from jax.experimental import pallas as pl
from jax.experimental.pallas import tpu as pltpu


def _round_up(n, m):
    return ((n + m - 1) // m) * m


# --------------------------------------------------------------------------
# Fused kernel: one batch tile per grid step, all weights resident in VMEM.
# refs = (x, h, w0x, w0h, b0, [w_l, b_l]*num_mid, w_heads, b_heads, slab_out)
# --------------------------------------------------------------------------
def _rnn_kernel(*refs, num_mid_layers, hidden_size):
    it = iter(refs)
    x_ref, h_ref = next(it), next(it)
    w0x_ref, w0h_ref, b0_ref = next(it), next(it), next(it)
    mid = [(next(it), next(it)) for _ in range(num_mid_layers)]
    wh_ref, bh_ref = next(it), next(it)
    slab_ref = next(it)

    f32 = jnp.float32
    mxu_dtype = w0x_ref.dtype          # f32 or bf16 MXU operands

    x = x_ref[...].astype(mxu_dtype)   # no-op when input dtype == weight dtype
    h = h_ref[...].astype(mxu_dtype)

    # Layer 0: relu(cat(x, h) @ W0^T + b0) == relu(x @ W0x + h @ W0h + b0)
    c = (jnp.dot(x, w0x_ref[...], preferred_element_type=f32)
         + jnp.dot(h, w0h_ref[...], preferred_element_type=f32)
         + b0_ref[...])
    c = jnp.maximum(c, 0.0)

    # Remaining hidden layers (statically unrolled; traced once).
    for w_ref, b_ref in mid:
        c = (jnp.dot(c.astype(mxu_dtype), w_ref[...], preferred_element_type=f32)
             + b_ref[...])
        c = jnp.maximum(c, 0.0)

    # Fused heads: one lane-dense matmul against [Wi2h | Wi2o | 0] (H, n_pad).
    head = (jnp.dot(c.astype(mxu_dtype), wh_ref[...], preferred_element_type=f32)
            + bh_ref[...])
    lane = jax.lax.broadcasted_iota(jnp.int32, head.shape, 1)
    slab = jnp.where(lane < hidden_size, jnp.tanh(head), head)  # tanh on first H lanes
    slab_ref[...] = slab.astype(slab_ref.dtype)                 # single full-width store


# --------------------------------------------------------------------------
# One-time weight layout plumbing (hoist out of any per-timestep loop):
# torch (out, in) -> (in, out); split layer 0 across x|h; fuse + lane-pad heads.
# params: {"layers": [(W, b), ...], "i2h": (W, b), "i2o": (W, b)} in torch layout.
# --------------------------------------------------------------------------
def prepare_simple_rnn_params(params, input_size, *, param_dtype=jnp.float32):
    (W0, b0), *mid_layers = params["layers"]
    Wi2h, bi2h = params["i2h"]
    Wi2o, bi2o = params["i2o"]
    I = input_size
    H = Wi2h.shape[0]
    O = Wi2o.shape[0]
    pd = jnp.dtype(param_dtype)

    w0x = W0[:, :I].T.astype(pd)                      # (I, H)
    w0h = W0[:, I:].T.astype(pd)                      # (H, H)
    b0r = b0.reshape(1, H).astype(jnp.float32)        # biases stay f32
    mids = [(W.T.astype(pd), b.reshape(1, -1).astype(jnp.float32))
            for (W, b) in mid_layers]

    n_heads = H + O
    n_pad = _round_up(max(n_heads, 128), 128)
    w_heads = jnp.zeros((H, n_pad), pd)
    w_heads = w_heads.at[:, :H].set(Wi2h.T.astype(pd))
    w_heads = w_heads.at[:, H:n_heads].set(Wi2o.T.astype(pd))
    b_heads = jnp.zeros((1, n_pad), jnp.float32)
    b_heads = b_heads.at[:, :H].set(bi2h.astype(jnp.float32))
    b_heads = b_heads.at[:, H:n_heads].set(bi2o.astype(jnp.float32))

    weights = [w0x, w0h, b0r]
    for w, b in mids:
        weights += [w, b]
    weights += [w_heads, b_heads]
    meta = dict(input_size=I, hidden_size=H, output_size=O,
                n_pad=n_pad, num_mid=len(mids))
    return weights, meta


# --------------------------------------------------------------------------
# Forward with pre-prepared weights.
# --------------------------------------------------------------------------
def simple_rnn_forward_prepared(x, h, weights, meta, *, block_b=512):
    B, I = x.shape
    _, H = h.shape
    assert I == meta["input_size"] and H == meta["hidden_size"]
    O = meta["output_size"]
    n_pad = meta["n_pad"]
    num_mid = meta["num_mid"]
    out_dtype = x.dtype

    # Batch tiling: always pad rows to a multiple of 8 (clean (8,128) tiles);
    # large sublane-dense tiles; >=2 grid steps when enough work exists so the
    # "parallel" grid axis shards across v7x's 2 TensorCores.
    Bp0 = _round_up(B, 8)
    if Bp0 <= 8:
        tile_b = Bp0
    elif Bp0 <= 2 * block_b:
        tile_b = _round_up(-(-Bp0 // 2), 8)
    else:
        tile_b = block_b
    steps = -(-Bp0 // tile_b)
    Bp = steps * tile_b
    pad = Bp - B
    if pad:
        x = jnp.pad(x, ((0, pad), (0, 0)))
        h = jnp.pad(h, ((0, pad), (0, 0)))
    grid = (steps,)

    # VMEM budget: weights x1 (single-buffered), streamed I/O tiles x2 (pipeline).
    out_itemsize = jnp.dtype(out_dtype).itemsize
    weight_bytes = sum(int(w.size) * w.dtype.itemsize for w in weights)
    io_tile_bytes = tile_b * (I * x.dtype.itemsize + H * h.dtype.itemsize
                              + n_pad * out_itemsize)
    vmem_need = weight_bytes + 2 * io_tile_bytes
    assert vmem_need < 48 * 1024 * 1024, (
        "resident weights + tiles exceed the v7x 64 MiB/TC VMEM budget; "
        "add a K/N weight-tiling grid axis or use bf16 weights")
    vmem_limit = int(min(max(2 * vmem_need, 32 * 1024 * 1024), 64 * 1024 * 1024))

    flops = 2 * Bp * ((I + H) * H + num_mid * H * H + H * n_pad)
    bytes_accessed = weight_bytes + Bp * (I * x.dtype.itemsize
                                          + H * h.dtype.itemsize
                                          + n_pad * out_itemsize)
    cost = pl.CostEstimate(flops=flops, transcendentals=Bp * n_pad,
                           bytes_accessed=bytes_accessed)

    def batch_spec(cols):
        return pl.BlockSpec((tile_b, cols), lambda i: (i, 0))

    def run(single_buffer_weights):
        if single_buffer_weights:
            def resident_spec(shape):
                # Constant index_map -> one VMEM copy is enough; halves weight VMEM.
                return pl.BlockSpec(shape, lambda i: (0, 0),
                                    pipeline_mode=pl.Buffered(1))
        else:
            def resident_spec(shape):
                return pl.BlockSpec(shape, lambda i: (0, 0))

        in_specs = ([batch_spec(I), batch_spec(H)]
                    + [resident_spec(w.shape) for w in weights])
        out_specs = batch_spec(n_pad)

        return pl.pallas_call(
            functools.partial(_rnn_kernel, num_mid_layers=num_mid,
                              hidden_size=H),
            out_shape=jax.ShapeDtypeStruct((Bp, n_pad), out_dtype),
            grid_spec=pltpu.PrefetchScalarGridSpec(
                num_scalar_prefetch=0,
                grid=grid,
                in_specs=in_specs,
                out_specs=out_specs,
            ),
            compiler_params=pltpu.CompilerParams(
                dimension_semantics=("parallel",),
                vmem_limit_bytes=vmem_limit),
            cost_estimate=cost,
        )(x, h, *weights)

    try:
        slab = run(single_buffer_weights=True)
    except Exception:
        # pl.Buffered(1) unsupported on this jax version -> default double buffering.
        slab = run(single_buffer_weights=False)

    # Slab layout: [ tanh(i2h(c)) (H lanes) | i2o(c) (O lanes) | zero pad ]
    h_new = slab[:B, :H]
    out = slab[:B, H:H + O]
    return out, h_new

    # TODO(synk): for multi-timestep use, add a timestep grid axis (marked
    # "arbitrary", last) with the hidden state carried in VMEM scratch so it
    # never round-trips HBM between steps.


def simple_rnn_forward(x, h, params, *, param_dtype=jnp.float32, block_b=512):
    weights, meta = prepare_simple_rnn_params(params, x.shape[1],
                                              param_dtype=param_dtype)
    return simple_rnn_forward_prepared(x, h, weights, meta, block_b=block_b)


if __name__ == "__main__":
    input_size, hidden_size, output_size, num_layers = 16, 32, 8, 2
    batch = 2

    key = jax.random.PRNGKey(0)

    def linear_init(k, out_f, in_f):
        # mirrors PyTorch nn.Linear default init: U(-1/sqrt(fan_in), 1/sqrt(fan_in))
        kw, kb = jax.random.split(k)
        bound = 1.0 / (in_f ** 0.5)
        W = jax.random.uniform(kw, (out_f, in_f), jnp.float32, -bound, bound)
        b = jax.random.uniform(kb, (out_f,), jnp.float32, -bound, bound)
        return W, b

    keys = jax.random.split(key, num_layers + 3)
    layers = [linear_init(keys[0], hidden_size, input_size + hidden_size)]
    for l in range(1, num_layers):
        layers.append(linear_init(keys[l], hidden_size, hidden_size))
    i2h = linear_init(keys[num_layers], hidden_size, hidden_size)
    i2o = linear_init(keys[num_layers + 1], output_size, hidden_size)
    params = {"layers": layers, "i2h": i2h, "i2o": i2o}

    x = jax.random.normal(keys[num_layers + 2], (batch, input_size), jnp.float32)
    h0 = jnp.zeros((batch, hidden_size), jnp.float32)   # SimpleRNN.initHidden

    # Pure-JAX reference with exact PyTorch forward semantics.
    def ref_forward(xx, hh, p):
        c = jnp.concatenate([xx, hh], axis=1)
        for W, b in p["layers"]:
            c = jnp.maximum(c @ W.T + b, 0.0)
        Wh, bh = p["i2h"]
        Wo, bo = p["i2o"]
        return c @ Wo.T + bo, jnp.tanh(c @ Wh.T + bh)

    # ---- f32 weights: weight prep hoisted once, two recurrent timesteps. ----
    weights_f32, meta = prepare_simple_rnn_params(params, input_size,
                                                  param_dtype=jnp.float32)
    out1, h1 = simple_rnn_forward_prepared(x, h0, weights_f32, meta)
    out2, h2 = simple_rnn_forward_prepared(x, h1, weights_f32, meta)
    out1, h1, out2, h2 = jax.block_until_ready((out1, h1, out2, h2))

    r_out1, r_h1 = ref_forward(x, h0, params)
    r_out2, r_h2 = ref_forward(x, r_h1, params)

    assert out1.shape == (batch, output_size) and h1.shape == (batch, hidden_size)
    assert jnp.allclose(out1, r_out1, atol=1e-5, rtol=1e-5), "output mismatch (step 1)"
    assert jnp.allclose(h1, r_h1, atol=1e-5, rtol=1e-5), "hidden mismatch (step 1)"
    assert jnp.allclose(out2, r_out2, atol=1e-5, rtol=1e-5), "output mismatch (step 2)"
    assert jnp.allclose(h2, r_h2, atol=1e-5, rtol=1e-5), "hidden mismatch (step 2)"

    # ---- bf16 MXU-operand path (v6e/v7x): looser tolerance is expected. ----
    out_bf, h_bf = simple_rnn_forward(x, h0, params, param_dtype=jnp.bfloat16)
    out_bf, h_bf = jax.block_until_ready((out_bf, h_bf))
    assert jnp.allclose(out_bf, r_out1, atol=5e-2, rtol=5e-2), "bf16 output mismatch"
    assert jnp.allclose(h_bf, r_h1, atol=5e-2, rtol=5e-2), "bf16 hidden mismatch"

    print("KERNEL_OK")
</pallas_src>

<mosaic_0001>
module attributes {stable_mosaic.version = 11 : i64} {
  func.func @_rnn_kernel(%arg0: i32, %arg1: memref<8x16xf32, #tpu.memory_space<vmem>>, %arg2: memref<8x32xf32, #tpu.memory_space<vmem>>, %arg3: memref<16x32xf32, #tpu.memory_space<vmem>>, %arg4: memref<32x32xf32, #tpu.memory_space<vmem>>, %arg5: memref<1x32xf32, #tpu.memory_space<vmem>>, %arg6: memref<32x32xf32, #tpu.memory_space<vmem>>, %arg7: memref<1x32xf32, #tpu.memory_space<vmem>>, %arg8: memref<32x128xf32, #tpu.memory_space<vmem>>, %arg9: memref<1x128xf32, #tpu.memory_space<vmem>>, %arg10: memref<8x128xf32, #tpu.memory_space<vmem>>) attributes {dimension_semantics = [#tpu.dimension_semantics<parallel>], iteration_bounds = array<i64: 1>, scalar_prefetch = 0 : i64, scratch_operands = 0 : i64, tpu.core_type = #tpu.core_type<tc>, window_params = [{transform_indices = @transform_0, window_bounds = array<i64: 8, 16>}, {transform_indices = @transform_1, window_bounds = array<i64: 8, 32>}, {pipeline_mode = #tpu.pipeline_mode<synchronous>, transform_indices = @transform_2, window_bounds = array<i64: 16, 32>}, {pipeline_mode = #tpu.pipeline_mode<synchronous>, transform_indices = @transform_3, window_bounds = array<i64: 32, 32>}, {pipeline_mode = #tpu.pipeline_mode<synchronous>, transform_indices = @transform_4, window_bounds = array<i64: 1, 32>}, {pipeline_mode = #tpu.pipeline_mode<synchronous>, transform_indices = @transform_5, window_bounds = array<i64: 32, 32>}, {pipeline_mode = #tpu.pipeline_mode<synchronous>, transform_indices = @transform_6, window_bounds = array<i64: 1, 32>}, {pipeline_mode = #tpu.pipeline_mode<synchronous>, transform_indices = @transform_7, window_bounds = array<i64: 32, 128>}, {pipeline_mode = #tpu.pipeline_mode<synchronous>, transform_indices = @transform_8, window_bounds = array<i64: 1, 128>}, {transform_indices = @transform_9, window_bounds = array<i64: 8, 128>}]} {
    %c0 = arith.constant 0 : index
    %c0_0 = arith.constant 0 : index
    %0 = vector.load %arg1[%c0, %c0_0] : memref<8x16xf32, #tpu.memory_space<vmem>>, vector<8x16xf32>
    %c0_1 = arith.constant 0 : index
    %c0_2 = arith.constant 0 : index
    %1 = vector.load %arg2[%c0_1, %c0_2] : memref<8x32xf32, #tpu.memory_space<vmem>>, vector<8x32xf32>
    %c0_3 = arith.constant 0 : index
    %c0_4 = arith.constant 0 : index
    %2 = vector.load %arg3[%c0_3, %c0_4] : memref<16x32xf32, #tpu.memory_space<vmem>>, vector<16x32xf32>
    %cst = arith.constant dense<0.000000e+00> : vector<8x32xf32>
    %3 = tpu.matmul %0, %2, %cst {dimension_numbers = #tpu.dot_dimension_numbers<[1], [0], [0], [1], [0, 0, 1, 1], [], []>} : vector<8x16xf32>, vector<16x32xf32>, vector<8x32xf32> -> vector<8x32xf32>
    %c0_5 = arith.constant 0 : index
    %c0_6 = arith.constant 0 : index
    %4 = vector.load %arg4[%c0_5, %c0_6] : memref<32x32xf32, #tpu.memory_space<vmem>>, vector<32x32xf32>
    %cst_7 = arith.constant dense<0.000000e+00> : vector<8x32xf32>
    %5 = tpu.matmul %1, %4, %cst_7 {dimension_numbers = #tpu.dot_dimension_numbers<[1], [0], [0], [1], [0, 0, 1, 1], [], []>} : vector<8x32xf32>, vector<32x32xf32>, vector<8x32xf32> -> vector<8x32xf32>
    %6 = arith.addf %3, %5 : vector<8x32xf32>
    %c0_8 = arith.constant 0 : index
    %c0_9 = arith.constant 0 : index
    %7 = vector.load %arg5[%c0_8, %c0_9] : memref<1x32xf32, #tpu.memory_space<vmem>>, vector<1x32xf32>
    %8 = vector.broadcast %7 : vector<1x32xf32> to vector<8x32xf32>
    %9 = arith.addf %6, %8 : vector<8x32xf32>
    %cst_10 = arith.constant 0.000000e+00 : f32
    %10 = vector.broadcast %cst_10 : f32 to vector<8x32xf32>
    %11 = arith.maximumf %9, %10 : vector<8x32xf32>
    %c0_11 = arith.constant 0 : index
    %c0_12 = arith.constant 0 : index
    %12 = vector.load %arg6[%c0_11, %c0_12] : memref<32x32xf32, #tpu.memory_space<vmem>>, vector<32x32xf32>
    %cst_13 = arith.constant dense<0.000000e+00> : vector<8x32xf32>
    %13 = tpu.matmul %11, %12, %cst_13 {dimension_numbers = #tpu.dot_dimension_numbers<[1], [0], [0], [1], [0, 0, 1, 1], [], []>} : vector<8x32xf32>, vector<32x32xf32>, vector<8x32xf32> -> vector<8x32xf32>
    %c0_14 = arith.constant 0 : index
    %c0_15 = arith.constant 0 : index
    %14 = vector.load %arg7[%c0_14, %c0_15] : memref<1x32xf32, #tpu.memory_space<vmem>>, vector<1x32xf32>
    %15 = vector.broadcast %14 : vector<1x32xf32> to vector<8x32xf32>
    %16 = arith.addf %13, %15 : vector<8x32xf32>
    %cst_16 = arith.constant 0.000000e+00 : f32
    %17 = vector.broadcast %cst_16 : f32 to vector<8x32xf32>
    %18 = arith.maximumf %16, %17 : vector<8x32xf32>
    %c0_17 = arith.constant 0 : index
    %c0_18 = arith.constant 0 : index
    %19 = vector.load %arg8[%c0_17, %c0_18] : memref<32x128xf32, #tpu.memory_space<vmem>>, vector<32x128xf32>
    %cst_19 = arith.constant dense<0.000000e+00> : vector<8x128xf32>
    %20 = tpu.matmul %18, %19, %cst_19 {dimension_numbers = #tpu.dot_dimension_numbers<[1], [0], [0], [1], [0, 0, 1, 1], [], []>} : vector<8x32xf32>, vector<32x128xf32>, vector<8x128xf32> -> vector<8x128xf32>
    %c0_20 = arith.constant 0 : index
    %c0_21 = arith.constant 0 : index
    %21 = vector.load %arg9[%c0_20, %c0_21] : memref<1x128xf32, #tpu.memory_space<vmem>>, vector<1x128xf32>
    %22 = vector.broadcast %21 : vector<1x128xf32> to vector<8x128xf32>
    %23 = arith.addf %20, %22 : vector<8x128xf32>
    %24 = tpu.iota {dimensions = array<i32: 1>} : vector<8x128xi32>
    %c32_i32 = arith.constant 32 : i32
    %25 = vector.broadcast %c32_i32 : i32 to vector<8x128xi32>
    %26 = arith.cmpi slt, %24, %25 : vector<8x128xi32>
    %27 = math.tanh %23 : vector<8x128xf32>
    %28 = arith.select %26, %27, %23 : vector<8x128xi1>, vector<8x128xf32>
    %c0_22 = arith.constant 0 : index
    %c0_23 = arith.constant 0 : index
    %29 = vector.load %arg10[%c0_22, %c0_23] : memref<8x128xf32, #tpu.memory_space<vmem>>, vector<8x128xf32>
    tpu.vector_store %arg10[%c0_22, %c0_23], %28 {strides = array<i32>} : memref<8x128xf32, #tpu.memory_space<vmem>>, vector<8x128xf32>,
    return
  }
  func.func @transform_0(%arg0: i32) -> (i32, i32) {
    %c0_i32 = arith.constant 0 : i32
    %c0_i32_0 = arith.constant 0 : i32
    return %arg0, %c0_i32 : i32, i32
  }
  func.func @transform_1(%arg0: i32) -> (i32, i32) {
    %c0_i32 = arith.constant 0 : i32
    %c0_i32_0 = arith.constant 0 : i32
    return %arg0, %c0_i32 : i32, i32
  }
  func.func @transform_2(%arg0: i32) -> (i32, i32) {
    %c0_i32 = arith.constant 0 : i32
    %c0_i32_0 = arith.constant 0 : i32
    %c0_i32_1 = arith.constant 0 : i32
    return %c0_i32, %c0_i32_0 : i32, i32
  }
  func.func @transform_3(%arg0: i32) -> (i32, i32) {
    %c0_i32 = arith.constant 0 : i32
    %c0_i32_0 = arith.constant 0 : i32
    %c0_i32_1 = arith.constant 0 : i32
    return %c0_i32, %c0_i32_0 : i32, i32
  }
  func.func @transform_4(%arg0: i32) -> (i32, i32) {
    %c0_i32 = arith.constant 0 : i32
    %c0_i32_0 = arith.constant 0 : i32
    %c0_i32_1 = arith.constant 0 : i32
    return %c0_i32, %c0_i32_0 : i32, i32
  }
  func.func @transform_5(%arg0: i32) -> (i32, i32) {
    %c0_i32 = arith.constant 0 : i32
    %c0_i32_0 = arith.constant 0 : i32
    %c0_i32_1 = arith.constant 0 : i32
    return %c0_i32, %c0_i32_0 : i32, i32
  }
  func.func @transform_6(%arg0: i32) -> (i32, i32) {
    %c0_i32 = arith.constant 0 : i32
    %c0_i32_0 = arith.constant 0 : i32
    %c0_i32_1 = arith.constant 0 : i32
    return %c0_i32, %c0_i32_0 : i32, i32
  }
  func.func @transform_7(%arg0: i32) -> (i32, i32) {
    %c0_i32 = arith.constant 0 : i32
    %c0_i32_0 = arith.constant 0 : i32
    %c0_i32_1 = arith.constant 0 : i32
    return %c0_i32, %c0_i32_0 : i32, i32
  }
  func.func @transform_8(%arg0: i32) -> (i32, i32) {
    %c0_i32 = arith.constant 0 : i32
    %c0_i32_0 = arith.constant 0 : i32
    %c0_i32_1 = arith.constant 0 : i32
    return %c0_i32, %c0_i32_0 : i32, i32
  }
  func.func @transform_9(%arg0: i32) -> (i32, i32) {
    %c0_i32 = arith.constant 0 : i32
    %c0_i32_0 = arith.constant 0 : i32
    return %arg0, %c0_i32 : i32, i32
  }
}

module attributes {stable_mosaic.version = 11 : i64} {
  func.func @_rnn_kernel(%arg0: i32, %arg1: memref<8x16xf32, #tpu.memory_space<vmem>>, %arg2: memref<8x32xf32, #tpu.memory_space<vmem>>, %arg3: memref<16x32xf32, #tpu.memory_space<vmem>>, %arg4: memref<32x32xf32, #tpu.memory_space<vmem>>, %arg5: memref<1x32xf32, #tpu.memory_space<vmem>>, %arg6: memref<32x32xf32, #tpu.memory_space<vmem>>, %arg7: memref<1x32xf32, #tpu.memory_space<vmem>>, %arg8: memref<32x128xf32, #tpu.memory_space<vmem>>, %arg9: memref<1x128xf32, #tpu.memory_space<vmem>>, %arg10: memref<8x128xf32, #tpu.memory_space<vmem>>) attributes {dimension_semantics = [#tpu.dimension_semantics<parallel>], iteration_bounds = array<i64: 1>, scalar_prefetch = 0 : i64, scratch_operands = 0 : i64, tpu.core_type = #tpu.core_type<tc>, window_params = [{transform_indices = @transform_0, window_bounds = array<i64: 8, 16>}, {transform_indices = @transform_1, window_bounds = array<i64: 8, 32>}, {pipeline_mode = #tpu.pipeline_mode<synchronous>, transform_indices = @transform_2, window_bounds = array<i64: 16, 32>}, {pipeline_mode = #tpu.pipeline_mode<synchronous>, transform_indices = @transform_3, window_bounds = array<i64: 32, 32>}, {pipeline_mode = #tpu.pipeline_mode<synchronous>, transform_indices = @transform_4, window_bounds = array<i64: 1, 32>}, {pipeline_mode = #tpu.pipeline_mode<synchronous>, transform_indices = @transform_5, window_bounds = array<i64: 32, 32>}, {pipeline_mode = #tpu.pipeline_mode<synchronous>, transform_indices = @transform_6, window_bounds = array<i64: 1, 32>}, {pipeline_mode = #tpu.pipeline_mode<synchronous>, transform_indices = @transform_7, window_bounds = array<i64: 32, 128>}, {pipeline_mode = #tpu.pipeline_mode<synchronous>, transform_indices = @transform_8, window_bounds = array<i64: 1, 128>}, {transform_indices = @transform_9, window_bounds = array<i64: 8, 128>}]} {
    %c0 = arith.constant 0 : index
    %c0_0 = arith.constant 0 : index
    %0 = vector.load %arg1[%c0, %c0_0] : memref<8x16xf32, #tpu.memory_space<vmem>>, vector<8x16xf32>
    %c0_1 = arith.constant 0 : index
    %c0_2 = arith.constant 0 : index
    %1 = vector.load %arg2[%c0_1, %c0_2] : memref<8x32xf32, #tpu.memory_space<vmem>>, vector<8x32xf32>
    %c0_3 = arith.constant 0 : index
    %c0_4 = arith.constant 0 : index
    %2 = vector.load %arg3[%c0_3, %c0_4] : memref<16x32xf32, #tpu.memory_space<vmem>>, vector<16x32xf32>
    %cst = arith.constant dense<0.000000e+00> : vector<8x32xf32>
    %3 = tpu.matmul %0, %2, %cst {dimension_numbers = #tpu.dot_dimension_numbers<[1], [0], [0], [1], [0, 0, 1, 1], [], []>} : vector<8x16xf32>, vector<16x32xf32>, vector<8x32xf32> -> vector<8x32xf32>
    %c0_5 = arith.constant 0 : index
    %c0_6 = arith.constant 0 : index
    %4 = vector.load %arg4[%c0_5, %c0_6] : memref<32x32xf32, #tpu.memory_space<vmem>>, vector<32x32xf32>
    %cst_7 = arith.constant dense<0.000000e+00> : vector<8x32xf32>
    %5 = tpu.matmul %1, %4, %cst_7 {dimension_numbers = #tpu.dot_dimension_numbers<[1], [0], [0], [1], [0, 0, 1, 1], [], []>} : vector<8x32xf32>, vector<32x32xf32>, vector<8x32xf32> -> vector<8x32xf32>
    %6 = arith.addf %3, %5 : vector<8x32xf32>
    %c0_8 = arith.constant 0 : index
    %c0_9 = arith.constant 0 : index
    %7 = vector.load %arg5[%c0_8, %c0_9] : memref<1x32xf32, #tpu.memory_space<vmem>>, vector<1x32xf32>
    %8 = vector.broadcast %7 : vector<1x32xf32> to vector<8x32xf32>
    %9 = arith.addf %6, %8 : vector<8x32xf32>
    %cst_10 = arith.constant 0.000000e+00 : f32
    %10 = vector.broadcast %cst_10 : f32 to vector<8x32xf32>
    %11 = arith.maximumf %9, %10 : vector<8x32xf32>
    %c0_11 = arith.constant 0 : index
    %c0_12 = arith.constant 0 : index
    %12 = vector.load %arg6[%c0_11, %c0_12] : memref<32x32xf32, #tpu.memory_space<vmem>>, vector<32x32xf32>
    %cst_13 = arith.constant dense<0.000000e+00> : vector<8x32xf32>
    %13 = tpu.matmul %11, %12, %cst_13 {dimension_numbers = #tpu.dot_dimension_numbers<[1], [0], [0], [1], [0, 0, 1, 1], [], []>} : vector<8x32xf32>, vector<32x32xf32>, vector<8x32xf32> -> vector<8x32xf32>
    %c0_14 = arith.constant 0 : index
    %c0_15 = arith.constant 0 : index
    %14 = vector.load %arg7[%c0_14, %c0_15] : memref<1x32xf32, #tpu.memory_space<vmem>>, vector<1x32xf32>
    %15 = vector.broadcast %14 : vector<1x32xf32> to vector<8x32xf32>
    %16 = arith.addf %13, %15 : vector<8x32xf32>
    %cst_16 = arith.constant 0.000000e+00 : f32
    %17 = vector.broadcast %cst_16 : f32 to vector<8x32xf32>
    %18 = arith.maximumf %16, %17 : vector<8x32xf32>
    %c0_17 = arith.constant 0 : index
    %c0_18 = arith.constant 0 : index
    %19 = vector.load %arg8[%c0_17, %c0_18] : memref<32x128xf32, #tpu.memory_space<vmem>>, vector<32x128xf32>
    %cst_19 = arith.constant dense<0.000000e+00> : vector<8x128xf32>
    %20 = tpu.matmul %18, %19, %cst_19 {dimension_numbers = #tpu.dot_dimension_numbers<[1], [0], [0], [1], [0, 0, 1, 1], [], []>} : vector<8x32xf32>, vector<32x128xf32>, vector<8x128xf32> -> vector<8x128xf32>
    %c0_20 = arith.constant 0 : index
    %c0_21 = arith.constant 0 : index
    %21 = vector.load %arg9[%c0_20, %c0_21] : memref<1x128xf32, #tpu.memory_space<vmem>>, vector<1x128xf32>
    %22 = vector.broadcast %21 : vector<1x128xf32> to vector<8x128xf32>
    %23 = arith.addf %20, %22 : vector<8x128xf32>
    %24 = tpu.iota {dimensions = array<i32: 1>} : vector<8x128xi32>
    %c32_i32 = arith.constant 32 : i32
    %25 = vector.broadcast %c32_i32 : i32 to vector<8x128xi32>
    %26 = arith.cmpi slt, %24, %25 : vector<8x128xi32>
    %27 = math.tanh %23 : vector<8x128xf32>
    %28 = arith.select %26, %27, %23 : vector<8x128xi1>, vector<8x128xf32>
    %c0_22 = arith.constant 0 : index
    %c0_23 = arith.constant 0 : index
    %29 = vector.load %arg10[%c0_22, %c0_23] : memref<8x128xf32, #tpu.memory_space<vmem>>, vector<8x128xf32>
    tpu.vector_store %arg10[%c0_22, %c0_23], %28 {strides = array<i32>} : memref<8x128xf32, #tpu.memory_space<vmem>>, vector<8x128xf32>,
    return
  }
  func.func @transform_0(%arg0: i32) -> (i32, i32) {
    %c0_i32 = arith.constant 0 : i32
    %c0_i32_0 = arith.constant 0 : i32
    return %arg0, %c0_i32 : i32, i32
  }
  func.func @transform_1(%arg0: i32) -> (i32, i32) {
    %c0_i32 = arith.constant 0 : i32
    %c0_i32_0 = arith.constant 0 : i32
    return %arg0, %c0_i32 : i32, i32
  }
  func.func @transform_2(%arg0: i32) -> (i32, i32) {
    %c0_i32 = arith.constant 0 : i32
    %c0_i32_0 = arith.constant 0 : i32
    %c0_i32_1 = arith.constant 0 : i32
    return %c0_i32, %c0_i32_0 : i32, i32
  }
  func.func @transform_3(%arg0: i32) -> (i32, i32) {
    %c0_i32 = arith.constant 0 : i32
    %c0_i32_0 = arith.constant 0 : i32
    %c0_i32_1 = arith.constant 0 : i32
    return %c0_i32, %c0_i32_0 : i32, i32
  }
  func.func @transform_4(%arg0: i32) -> (i32, i32) {
    %c0_i32 = arith.constant 0 : i32
    %c0_i32_0 = arith.constant 0 : i32
    %c0_i32_1 = arith.constant 0 : i32
    return %c0_i32, %c0_i32_0 : i32, i32
  }
  func.func @transform_5(%arg0: i32) -> (i32, i32) {
    %c0_i32 = arith.constant 0 : i32
    %c0_i32_0 = arith.constant 0 : i32
    %c0_i32_1 = arith.constant 0 : i32
    return %c0_i32, %c0_i32_0 : i32, i32
  }
  func.func @transform_6(%arg0: i32) -> (i32, i32) {
    %c0_i32 = arith.constant 0 : i32
    %c0_i32_0 = arith.constant 0 : i32
    %c0_i32_1 = arith.constant 0 : i32
    return %c0_i32, %c0_i32_0 : i32, i32
  }
  func.func @transform_7(%arg0: i32) -> (i32, i32) {
    %c0_i32 = arith.constant 0 : i32
    %c0_i32_0 = arith.constant 0 : i32
    %c0_i32_1 = arith.constant 0 : i32
    return %c0_i32, %c0_i32_0 : i32, i32
  }
  func.func @transform_8(%arg0: i32) -> (i32, i32) {
    %c0_i32 = arith.constant 0 : i32
    %c0_i32_0 = arith.constant 0 : i32
    %c0_i32_1 = arith.constant 0 : i32
    return %c0_i32, %c0_i32_0 : i32, i32
  }
  func.func @transform_9(%arg0: i32) -> (i32, i32) {
    %c0_i32 = arith.constant 0 : i32
    %c0_i32_0 = arith.constant 0 : i32
    return %arg0, %c0_i32 : i32, i32
  }
}

</mosaic_0001>

<bundles_post_ra>
// kernel: tpu_custom_call.1
= control target key start
LH: loop header
LB: loop body
LE: loop exit
PB: predicated region body
PF: predicated region fallthrough
CT: control target
= control target key end

     0   :  { %14 = vsyncpa [#allocation3], 0  ;;  %s562_s0 = inlined_call_operand.hbm [shape: f32[8,16], index: 0, kind: input, shape index: {}]   ;;  %s563_s1 = inlined_call_operand.hbm [shape: f32[8,32], index: 1, kind: input, shape index: {}]   ;;  %s564_s2 = inlined_call_operand.hbm [shape: f32[16,32], index: 2, kind: input, shape index: {}]   ;;  %s565_s3 = inlined_call_operand.hbm [shape: f32[32,32], index: 3, kind: input, shape index: {}]   ;;  %s566_s4 = inlined_call_operand.vmem [shape: f32[1,32], index: 4, kind: input, shape index: {}]   ;;  %s567_s5 = inlined_call_operand.hbm [shape: f32[32,32], index: 5, kind: input, shape index: {}]   ;;  %s568_s6 = inlined_call_operand.vmem [shape: f32[1,32], index: 6, kind: input, shape index: {}]   ;;  %s569_s7 = inlined_call_operand.hbm [shape: f32[32,128], index: 7, kind: input, shape index: {}]   ;;  %s570_s8 = inlined_call_operand.vmem [shape: f32[1,128], index: 8, kind: input, shape index: {}]   ;;  %s571_s9 = inlined_call_operand.hbm [shape: f32[8,128], index: 9, kind: output, shape index: {}]  }
   0x1   :  { %15 = vsyncpa [#allocation6], 0 }
   0x2   :  { %16 = vsyncpa [#allocation9], 0 }
   0x3   :  { %17 = vsyncpa [#allocation12], 0  ;;  %s35_s11 = sshll.u32 %s563_s1, 4  ;;  %s36_s11 = int_to_ptr.hbm [resolvable:$true] %s35_s11 }
   0x4   :  { %18 = vsyncpa [#allocation4], 0  ;;  %s470_s12 = smov [#allocation5]   ;;  %s58_s16 = sshll.u32 %s565_s3, 4  ;;  %s59_s16 = int_to_ptr.hbm [resolvable:$true] %s58_s16 }
   0x5   :  { %s37_s13 = sshll.u32 %s470_s12, 4  ;;  %s471_s17 = smov [#allocation8]   ;;  %s38_s13 = int_to_ptr.vmem [resolvable:$true] %s37_s13 }
   0x6   :  { %40 = dma.hbm_to_vmem [thread:$0]  %s36_s11, 128, %s38_s13, [#allocation6]  }
   0x7   :  { %s60_s18 = sshll.u32 %s471_s17, 4  ;;  %s24_s21 = sshll.u32 %s562_s0, 4  ;;  %s61_s18 = int_to_ptr.vmem [resolvable:$true] %s60_s18  ;;  %s25_s21 = int_to_ptr.hbm [resolvable:$true] %s24_s21 }
   0x8   :  { %s472_s1 = smov 128   ;;  %s473_s22 = smov 8  }
   0x9   :  { %66 = dma.hbm_to_vmem [thread:$0]  %s59_s16, 512, %s61_s18, [#allocation9], %s472_s1, %s472_s1, %s473_s22  }
   0xa   :  { %s45_s25 = sshll.u32 %s564_s2, 4  ;;  %s474_s26 = smov [#allocation2]   ;;  %s46_s25 = int_to_ptr.hbm [resolvable:$true] %s45_s25 }
   0xb   :  { %s26_s27 = sshll.u32 %s474_s26, 4  ;;  %s475_s3 = smov [#allocation7]   ;;  %s27_s27 = int_to_ptr.vmem [resolvable:$true] %s26_s27 }
   0xc   :  { %29 = dma.hbm_to_vmem [thread:$0]  %s25_s21, 128, %s27_s27, [#allocation3]  }
   0xd   :  { %s47_s28 = sshll.u32 %s475_s3, 4  ;;  %s73_s0 = sshll.u32 %s567_s5, 4  ;;  %s48_s28 = int_to_ptr.vmem [resolvable:$true] %s47_s28  ;;  %s74_s0 = int_to_ptr.hbm [resolvable:$true] %s73_s0 }
   0xe   :  { %53 = dma.hbm_to_vmem [thread:$0]  %s46_s25, 256, %s48_s28, [#allocation6], %s472_s1, %s472_s1, %s473_s22  }
   0xf   :  { %s88_s12 = sshll.u32 %s569_s7, 4  ;;  %s476_s13 = smov [#allocation10]   ;;  %s89_s12 = int_to_ptr.hbm [resolvable:$true] %s88_s12 }
  0x10   :  { %s75_s2 = sshll.u32 %s476_s13, 4  ;;  %s477_s14 = smov [#allocation11]   ;;  %s76_s2 = int_to_ptr.vmem [resolvable:$true] %s75_s2 }
  0x11   :  { %81 = dma.hbm_to_vmem [thread:$0]  %s74_s0, 512, %s76_s2, [#allocation9], %s472_s1, %s472_s1, %s473_s22  }
  0x12   :  { %s90_s15 = sshll.u32 %s477_s14, 4  ;;  %s91_s15 = int_to_ptr.vmem [resolvable:$true] %s90_s15 }
  0x13   :  { %96 = dma.hbm_to_vmem [thread:$0]  %s89_s12, 512, %s91_s15, [#allocation12], %s472_s1, %s472_s1, %s473_s22  }
  0x14   :  { %460 = dma.done.wait [#allocation3], 128  }
  0x15   :  { %461 = vsyncadd [#allocation3], 4294967168 }
  0x16   :  { %462 = dma.done.wait [#allocation6], 384  }
  0x17   :  { %463 = vsyncadd [#allocation6], 4294966912 }
  0x18   :  { %464 = dma.done.wait [#allocation9], 1024  }
  0x19   :  { %465 = vsyncadd [#allocation9], 4294966272 }
  0x1a   :  { %466 = dma.done.wait [#allocation12], 512  }
  0x1b   :  { %467 = vsyncadd [#allocation12], 4294966784  ;;  %v130_v0 = vld [vmem:[#allocation8 + $0x18] sm:$0xff]  ;;  %v129_v1 = vld [vmem:[#allocation8 + $0x10] sm:$0xff]  ;;  %vm155_vm0 = vcmask 130048   ;;  %vm131_vm1 = vcmask 261120   ;;  %v248_v27 = vlaneseq }
  0x1c   :  { %147 = vmatpush.msra.mxu0 %v130_v0  ;;  %v126_v2 = vld [vmem:[#allocation7 + $0x8] sm:$0xff]  ;;  %v125_v3 = vld [vmem:[#allocation7] sm:$0xff]  ;;  %v128_v4 = vld [vmem:[#allocation8 + $0x8] sm:$0xff]  ;;  %s478_s19 = smov [#allocation13]  }
  0x1d   :  { %173 = vmatpush.msra.mxu1 %v126_v2  ;;  %v123_v5 = vld [vmem:[#allocation2] sm:$0xff]  ;;  %v124_v7 = vld [vmem:[#allocation5] sm:$0xff]  ;;  %v188_v8 = vld [vmem:[#allocation10 + $0x18] sm:$0xff]  ;;  %v249_v30 = vand.u32 127, %v248_v27  ;;  %s259_s20 = sshll.u32 %s478_s19, 4  ;;  %s260_s20 = int_to_ptr.vmem [resolvable:$true] %s259_s20 }
  0x1e   :  { %148 = vmatpush.msra.mxu0 %v129_v1  ;;  %v127_v6 = vld [vmem:[#allocation8] sm:$0xff]  ;;  %208 = vmatpush.msra.mxu2 %v188_v8  ;;  %v187_v9 = vld [vmem:[#allocation10 + $0x10] sm:$0xff]  ;;  %v186_v10 = vld [vmem:[#allocation10 + $0x8] sm:$0xff] }
  0x1f   :  { %174 = vmatpush.msra.mxu1 %v125_v3  ;;  %v185_v11 = vld [vmem:[#allocation10] sm:$0xff]  ;;  %v220_v12 = vld [vmem:[#allocation11 + $0x18] sm:$0xff]  ;;  %v219_v19 = vld [vmem:[#allocation11 + $0x10] sm:$0xff]  ;;  %vm250_vm2 = vcmp.lt.s32.totalorder %v249_v30, 32 }
  0x20   :  { %149 = vmatpush.msra.mxu0 %v128_v4  ;;  %275 = vmatmul.msk.f32.vlgmr.msra.gmra.mxu1 %vm155_vm0, %v123_v5  ;;  %v287_v14 = vld [vmem:[%s566_s4] ss:$0 sm:$0xff]  ;;  %v218_v20 = vld [vmem:[#allocation11 + $0x8] sm:$0xff] }
  0x21   :  { %209 = vmatpush.msra.mxu2 %v187_v9  ;;  %240 = vmatpush.msra.mxu3 %v220_v12  ;;  %v217_v21 = vld [vmem:[#allocation11] sm:$0xff] }
  0x22   :  { %150 = vmatpush.msra.mxu0 %v127_v6  ;;  %v288_v22 = vld [vmem:[%s568_s6] ss:$0 sm:$0xff]  ;;  %s261_s6 = sshll.u32 %s571_s9, 4  ;;  %s262_s6 = int_to_ptr.hbm [resolvable:$true] %s261_s6 }
  0x23   :  { %274 = vmatmul.msk.f32.vlgmr.msra.gmra.mxu0 %vm131_vm1, %v124_v7  ;;  %210 = vmatpush.msra.mxu2 %v186_v10  ;;  %v289_v26 = vld [vmem:[%s570_s8] ss:$0 sm:$0xff] }
  0x24   :  { %241 = vmatpush.msra.mxu3 %v219_v19 }
  0x25   :  { %211 = vmatpush.msra.mxu2 %v185_v11 }
  0x26   :  { %242 = vmatpush.msra.mxu3 %v218_v20 }
  0x28   :  { %243 = vmatpush.msra.mxu3 %v217_v21 }
  0x9d   :  { %v176_v13 = vpop.f32.mrf.mxu1 }
  0xa0   :  { %v152_v15 = vpop.f32.mrf.mxu0 }
  0xa1   :  { %v177_v16 = vadd.f32 %v176_v13, %v152_v15 }
  0xa3   :  { %v183_v17 = vadd.f32 %v287_v14, %v177_v16 }
  0xa5   :  { %v184_v18 = vmax.f32 %v183_v17, 0.0 }
  0xa7   :  { %276 = vmatmul.msk.f32.vlgmr.msra.gmra.mxu2 %vm131_vm1, %v184_v18 }
 0x12a   :  { %v213_v23 = vpop.f32.mrf.mxu2 }
 0x12b   :  { %v214_v24 = vadd.f32 %v288_v22, %v213_v23 }
 0x12d   :  { %v216_v25 = vmax.f32 %v214_v24, 0.0 }
 0x12f   :  { %277 = vmatmul.msk.f32.vlgmr.msra.gmra.mxu3 %vm131_vm1, %v216_v25 }
 0x1b2   :  { %v245_v28 = vpop.f32.mrf.mxu3 }
 0x1b3   :  { %v246_v29 = vadd.f32 %v289_v26, %v245_v28 }
 0x1b5   :  { %290 = vtanh.f32 %v246_v29 }
 0x1bb   :  { %v291_v31 = vpop.eup %290 }
 0x1bc   :  { %v252_v32 = vsel %vm250_vm2, %v291_v31, %v246_v29 }
 0x1bd   :  { %253 = vst [vmem:[#allocation13] sm:$0xff] %v252_v32 }
 0x1be   :  { %264 = dma.vmem_to_hbm [thread:$0]  %s260_s20, 128, %s262_s6, [#allocation4]  }
 0x1bf   :  { %468 = dma.done.wait [#allocation4], 128  }
 0x1c0   :  { %469 = vsyncadd [#allocation4], 4294967168 }
 0x1c1   :  { %269 = vsyncpa [#allocation3], 1 }
 0x1c2   :  { %270 = vsyncpa [#allocation6], 1 }
 0x1c3   :  { %271 = vsyncpa [#allocation9], 1 }
 0x1c4   :  { %272 = vsyncpa [#allocation12], 1 }
 0x1c5   :  { %273 = vsyncpa [#allocation4], 1 }

// kernel: tpu_custom_call.1
= control target key start
LH: loop header
LB: loop body
LE: loop exit
PB: predicated region body
PF: predicated region fallthrough
CT: control target
= control target key end

     0   :  { %14 = vsyncpa [#allocation3], 0  ;;  %s562_s0 = inlined_call_operand.hbm [shape: f32[8,16], index: 0, kind: input, shape index: {}]   ;;  %s563_s1 = inlined_call_operand.hbm [shape: f32[8,32], index: 1, kind: input, shape index: {}]   ;;  %s564_s2 = inlined_call_operand.hbm [shape: f32[16,32], index: 2, kind: input, shape index: {}]   ;;  %s565_s3 = inlined_call_operand.hbm [shape: f32[32,32], index: 3, kind: input, shape index: {}]   ;;  %s566_s4 = inlined_call_operand.vmem [shape: f32[1,32], index: 4, kind: input, shape index: {}]   ;;  %s567_s5 = inlined_call_operand.hbm [shape: f32[32,32], index: 5, kind: input, shape index: {}]   ;;  %s568_s6 = inlined_call_operand.vmem [shape: f32[1,32], index: 6, kind: input, shape index: {}]   ;;  %s569_s7 = inlined_call_operand.hbm [shape: f32[32,128], index: 7, kind: input, shape index: {}]   ;;  %s570_s8 = inlined_call_operand.vmem [shape: f32[1,128], index: 8, kind: input, shape index: {}]   ;;  %s571_s9 = inlined_call_operand.hbm [shape: f32[8,128], index: 9, kind: output, shape index: {}]  }
   0x1   :  { %15 = vsyncpa [#allocation6], 0 }
   0x2   :  { %16 = vsyncpa [#allocation9], 0 }
   0x3   :  { %17 = vsyncpa [#allocation12], 0  ;;  %s35_s11 = sshll.u32 %s563_s1, 4  ;;  %s36_s11 = int_to_ptr.hbm [resolvable:$true] %s35_s11 }
   0x4   :  { %18 = vsyncpa [#allocation4], 0  ;;  %s470_s12 = smov [#allocation5]   ;;  %s58_s16 = sshll.u32 %s565_s3, 4  ;;  %s59_s16 = int_to_ptr.hbm [resolvable:$true] %s58_s16 }
   0x5   :  { %s37_s13 = sshll.u32 %s470_s12, 4  ;;  %s471_s17 = smov [#allocation8]   ;;  %s38_s13 = int_to_ptr.vmem [resolvable:$true] %s37_s13 }
   0x6   :  { %40 = dma.hbm_to_vmem [thread:$0]  %s36_s11, 128, %s38_s13, [#allocation6]  }
   0x7   :  { %s60_s18 = sshll.u32 %s471_s17, 4  ;;  %s24_s21 = sshll.u32 %s562_s0, 4  ;;  %s61_s18 = int_to_ptr.vmem [resolvable:$true] %s60_s18  ;;  %s25_s21 = int_to_ptr.hbm [resolvable:$true] %s24_s21 }
   0x8   :  { %s472_s1 = smov 128   ;;  %s473_s22 = smov 8  }
   0x9   :  { %66 = dma.hbm_to_vmem [thread:$0]  %s59_s16, 512, %s61_s18, [#allocation9], %s472_s1, %s472_s1, %s473_s22  }
   0xa   :  { %s45_s25 = sshll.u32 %s564_s2, 4  ;;  %s474_s26 = smov [#allocation2]   ;;  %s46_s25 = int_to_ptr.hbm [resolvable:$true] %s45_s25 }
   0xb   :  { %s26_s27 = sshll.u32 %s474_s26, 4  ;;  %s475_s3 = smov [#allocation7]   ;;  %s27_s27 = int_to_ptr.vmem [resolvable:$true] %s26_s27 }
   0xc   :  { %29 = dma.hbm_to_vmem [thread:$0]  %s25_s21, 128, %s27_s27, [#allocation3]  }
   0xd   :  { %s47_s28 = sshll.u32 %s475_s3, 4  ;;  %s73_s0 = sshll.u32 %s567_s5, 4  ;;  %s48_s28 = int_to_ptr.vmem [resolvable:$true] %s47_s28  ;;  %s74_s0 = int_to_ptr.hbm [resolvable:$true] %s73_s0 }
   0xe   :  { %53 = dma.hbm_to_vmem [thread:$0]  %s46_s25, 256, %s48_s28, [#allocation6], %s472_s1, %s472_s1, %s473_s22  }
   0xf   :  { %s88_s12 = sshll.u32 %s569_s7, 4  ;;  %s476_s13 = smov [#allocation10]   ;;  %s89_s12 = int_to_ptr.hbm [resolvable:$true] %s88_s12 }
  0x10   :  { %s75_s2 = sshll.u32 %s476_s13, 4  ;;  %s477_s14 = smov [#allocation11]   ;;  %s76_s2 = int_to_ptr.vmem [resolvable:$true] %s75_s2 }
  0x11   :  { %81 = dma.hbm_to_vmem [thread:$0]  %s74_s0, 512, %s76_s2, [#allocation9], %s472_s1, %s472_s1, %s473_s22  }
  0x12   :  { %s90_s15 = sshll.u32 %s477_s14, 4  ;;  %s91_s15 = int_to_ptr.vmem [resolvable:$true] %s90_s15 }
  0x13   :  { %96 = dma.hbm_to_vmem [thread:$0]  %s89_s12, 512, %s91_s15, [#allocation12], %s472_s1, %s472_s1, %s473_s22  }
  0x14   :  { %460 = dma.done.wait [#allocation3], 128  }
  0x15   :  { %461 = vsyncadd [#allocation3], 4294967168 }
  0x16   :  { %462 = dma.done.wait [#allocation6], 384  }
  0x17   :  { %463 = vsyncadd [#allocation6], 4294966912 }
  0x18   :  { %464 = dma.done.wait [#allocation9], 1024  }
  0x19   :  { %465 = vsyncadd [#allocation9], 4294966272 }
  0x1a   :  { %466 = dma.done.wait [#allocation12], 512  }
  0x1b   :  { %467 = vsyncadd [#allocation12], 4294966784  ;;  %v130_v0 = vld [vmem:[#allocation8 + $0x18] sm:$0xff]  ;;  %v129_v1 = vld [vmem:[#allocation8 + $0x10] sm:$0xff]  ;;  %vm155_vm0 = vcmask 130048   ;;  %vm131_vm1 = vcmask 261120   ;;  %v248_v27 = vlaneseq }
  0x1c   :  { %147 = vmatpush.msra.mxu0 %v130_v0  ;;  %v126_v2 = vld [vmem:[#allocation7 + $0x8] sm:$0xff]  ;;  %v125_v3 = vld [vmem:[#allocation7] sm:$0xff]  ;;  %v128_v4 = vld [vmem:[#allocation8 + $0x8] sm:$0xff]  ;;  %s478_s19 = smov [#allocation13]  }
  0x1d   :  { %173 = vmatpush.msra.mxu1 %v126_v2  ;;  %v123_v5 = vld [vmem:[#allocation2] sm:$0xff]  ;;  %v124_v7 = vld [vmem:[#allocation5] sm:$0xff]  ;;  %v188_v8 = vld [vmem:[#allocation10 + $0x18] sm:$0xff]  ;;  %v249_v30 = vand.u32 127, %v248_v27  ;;  %s259_s20 = sshll.u32 %s478_s19, 4  ;;  %s260_s20 = int_to_ptr.vmem [resolvable:$true] %s259_s20 }
  0x1e   :  { %148 = vmatpush.msra.mxu0 %v129_v1  ;;  %v127_v6 = vld [vmem:[#allocation8] sm:$0xff]  ;;  %208 = vmatpush.msra.mxu2 %v188_v8  ;;  %v187_v9 = vld [vmem:[#allocation10 + $0x10] sm:$0xff]  ;;  %v186_v10 = vld [vmem:[#allocation10 + $0x8] sm:$0xff] }
  0x1f   :  { %174 = vmatpush.msra.mxu1 %v125_v3  ;;  %v185_v11 = vld [vmem:[#allocation10] sm:$0xff]  ;;  %v220_v12 = vld [vmem:[#allocation11 + $0x18] sm:$0xff]  ;;  %v219_v19 = vld [vmem:[#allocation11 + $0x10] sm:$0xff]  ;;  %vm250_vm2 = vcmp.lt.s32.totalorder %v249_v30, 32 }
  0x20   :  { %149 = vmatpush.msra.mxu0 %v128_v4  ;;  %275 = vmatmul.msk.f32.vlgmr.msra.gmra.mxu1 %vm155_vm0, %v123_v5  ;;  %v287_v14 = vld [vmem:[%s566_s4] ss:$0 sm:$0xff]  ;;  %v218_v20 = vld [vmem:[#allocation11 + $0x8] sm:$0xff] }
  0x21   :  { %209 = vmatpush.msra.mxu2 %v187_v9  ;;  %240 = vmatpush.msra.mxu3 %v220_v12  ;;  %v217_v21 = vld [vmem:[#allocation11] sm:$0xff] }
  0x22   :  { %150 = vmatpush.msra.mxu0 %v127_v6  ;;  %v288_v22 = vld [vmem:[%s568_s6] ss:$0 sm:$0xff]  ;;  %s261_s6 = sshll.u32 %s571_s9, 4  ;;  %s262_s6 = int_to_ptr.hbm [resolvable:$true] %s261_s6 }
  0x23   :  { %274 = vmatmul.msk.f32.vlgmr.msra.gmra.mxu0 %vm131_vm1, %v124_v7  ;;  %210 = vmatpush.msra.mxu2 %v186_v10  ;;  %v289_v26 = vld [vmem:[%s570_s8] ss:$0 sm:$0xff] }
  0x24   :  { %241 = vmatpush.msra.mxu3 %v219_v19 }
  0x25   :  { %211 = vmatpush.msra.mxu2 %v185_v11 }
  0x26   :  { %242 = vmatpush.msra.mxu3 %v218_v20 }
  0x28   :  { %243 = vmatpush.msra.mxu3 %v217_v21 }
  0x9d   :  { %v176_v13 = vpop.f32.mrf.mxu1 }
  0xa0   :  { %v152_v15 = vpop.f32.mrf.mxu0 }
  0xa1   :  { %v177_v16 = vadd.f32 %v176_v13, %v152_v15 }
  0xa3   :  { %v183_v17 = vadd.f32 %v287_v14, %v177_v16 }
  0xa5   :  { %v184_v18 = vmax.f32 %v183_v17, 0.0 }
  0xa7   :  { %276 = vmatmul.msk.f32.vlgmr.msra.gmra.mxu2 %vm131_vm1, %v184_v18 }
 0x12a   :  { %v213_v23 = vpop.f32.mrf.mxu2 }
 0x12b   :  { %v214_v24 = vadd.f32 %v288_v22, %v213_v23 }
 0x12d   :  { %v216_v25 = vmax.f32 %v214_v24, 0.0 }
 0x12f   :  { %277 = vmatmul.msk.f32.vlgmr.msra.gmra.mxu3 %vm131_vm1, %v216_v25 }
 0x1b2   :  { %v245_v28 = vpop.f32.mrf.mxu3 }
 0x1b3   :  { %v246_v29 = vadd.f32 %v289_v26, %v245_v28 }
 0x1b5   :  { %290 = vtanh.f32 %v246_v29 }
 0x1bb   :  { %v291_v31 = vpop.eup %290 }
 0x1bc   :  { %v252_v32 = vsel %vm250_vm2, %v291_v31, %v246_v29 }
 0x1bd   :  { %253 = vst [vmem:[#allocation13] sm:$0xff] %v252_v32 }
 0x1be   :  { %264 = dma.vmem_to_hbm [thread:$0]  %s260_s20, 128, %s262_s6, [#allocation4]  }
 0x1bf   :  { %468 = dma.done.wait [#allocation4], 128  }
 0x1c0   :  { %469 = vsyncadd [#allocation4], 4294967168 }
 0x1c1   :  { %269 = vsyncpa [#allocation3], 1 }
 0x1c2   :  { %270 = vsyncpa [#allocation6], 1 }
 0x1c3   :  { %271 = vsyncpa [#allocation9], 1 }
 0x1c4   :  { %272 = vsyncpa [#allocation12], 1 }
 0x1c5   :  { %273 = vsyncpa [#allocation4], 1 }

</bundles_post_ra>
